<compile_context>
chip_gen: v7x
topology: tpu7x:2x2x1
jax: 0.10.0
libtpu: 0.0.40
codegen_flags: <defaults>
</compile_context>

<pallas_src>
import jax
import jax.numpy as jnp
from jax import lax
from jax.experimental import pallas as pl
from jax.experimental.pallas import tpu as pltpu


def _round_up(x, m):
    return (x + m - 1) // m * m


def _proj_bias_kernel(x_ref, w_ref, b_ref, o_ref, acc_ref):
    """o = X @ W + b, tiled.

    grid axis 0 tiles M (= B*n_patches)  -> "parallel"
    grid axis 1 tiles K (= C_f*ww)       -> "arbitrary" (reduction, last)
    acc_ref is a per-M-tile (tm, N_pad) float32 scratch.
    """
    k = pl.program_id(1)

    @pl.when(k == 0)
    def _():
        acc_ref[...] = jnp.zeros_like(acc_ref)

    acc_ref[...] += jnp.dot(x_ref[...], w_ref[...],
                            preferred_element_type=jnp.float32)

    @pl.when(k == pl.num_programs(1) - 1)
    def _():
        o_ref[...] = (acc_ref[...] + b_ref[...]).astype(o_ref.dtype)


def hybrid_embed_1d_proj(feat, proj_w, proj_b, window_width,
                         *, tm_max=512, tk_max=1024):
    """HybridEmbed1D.forward (post-backbone part).

    feat:   (B, C_f, f_h, f_w)  backbone output, NCHW
    proj_w: (embed_dim, C_f, window_width)  Conv1d weight
    proj_b: (embed_dim,)                    Conv1d bias
    Returns (proj_x, (pad_W,), {'height': f_h, 'width': W_pad}).
    """
    B, C_f, f_h, f_w = feat.shape
    embed_dim = proj_w.shape[0]
    ww = window_width
    assert f_w >= ww
    div_w, mod_w = divmod(f_w, ww)
    pad_W = ww * (div_w + (1 if mod_w > 0 else 0)) - f_w
    W_pad = f_w + pad_W
    n_patches = W_pad // ww

    # --- mean over rows FIRST (f32), then the (much smaller) patch rearrangement.
    x_mean = feat.astype(jnp.float32).mean(axis=2)                 # (B, C_f, f_w)
    x_mean = jnp.pad(x_mean, ((0, 0), (0, 0), (0, pad_W)))         # (B, C_f, W_pad)
    xp = x_mean.reshape(B, C_f, n_patches, ww)
    xp = jnp.transpose(xp, (0, 2, 1, 3)).reshape(B * n_patches, C_f * ww)

    M, K, N = B * n_patches, C_f * ww, embed_dim

    # --- pad to hardware-friendly shapes (lane-dense N and K; M tiled).
    K_pad = _round_up(K, 128)
    N_pad = _round_up(N, 128)
    tm = min(tm_max, _round_up(M, 8))
    tk = min(tk_max, K_pad)
    M_pad = _round_up(M, tm)
    num_m = M_pad // tm
    num_k = K_pad // tk

    # bf16 operands for the MXU; bias & accumulation stay f32.
    xp_p = jnp.pad(xp, ((0, M_pad - M), (0, K_pad - K))).astype(jnp.bfloat16)
    w2d = proj_w.reshape(embed_dim, C_f * ww).T                    # (K, N), col = c*ww + k
    w_p = jnp.pad(w2d, ((0, K_pad - K), (0, N_pad - N))).astype(jnp.bfloat16)
    b_p = jnp.pad(proj_b.reshape(1, N).astype(jnp.float32),
                  ((0, 0), (0, N_pad - N)))

    out = pl.pallas_call(
        _proj_bias_kernel,
        out_shape=jax.ShapeDtypeStruct((M_pad, N_pad), feat.dtype),
        grid_spec=pltpu.PrefetchScalarGridSpec(
            num_scalar_prefetch=0,
            grid=(num_m, num_k),
            in_specs=[
                pl.BlockSpec((tm, tk), lambda m, k: (m, k)),
                pl.BlockSpec((tk, N_pad), lambda m, k: (k, 0)),
                pl.BlockSpec((1, N_pad), lambda m, k: (0, 0)),
            ],
            out_specs=pl.BlockSpec((tm, N_pad), lambda m, k: (m, 0)),
            scratch_shapes=[pltpu.VMEM((tm, N_pad), jnp.float32)],
        ),
        compiler_params=pltpu.CompilerParams(
            dimension_semantics=("parallel", "arbitrary")),
    )(xp_p, w_p, b_p)

    proj_x = out[:M, :N].reshape(B, n_patches, embed_dim)
    return proj_x, (pad_W,), {"height": f_h, "width": W_pad}


# TODO(synk): the backbone is an arbitrary external nn.Module in the reference;
# modeled here as a small deterministic stride-2 conv + ReLU in plain JAX (glue).
def simple_backbone(x, conv_w, conv_b):
    # x: (B, in_chans, H, W) NCHW; conv_w: (C_f, in_chans, 3, 3) OIHW.
    y = lax.conv_general_dilated(
        x, conv_w, window_strides=(2, 2), padding="VALID",
        dimension_numbers=("NCHW", "OIHW", "NCHW"))
    y = y + conv_b.reshape(1, -1, 1, 1)
    return jax.nn.relu(y)


if __name__ == "__main__":
    key = jax.random.PRNGKey(0)
    k_x, k_bw, k_bb, k_pw, k_pb = jax.random.split(key, 5)

    B, in_chans, H, W = 2, 4, 16, 16
    feature_dim, embed_dim, window_width = 8, 32, 2

    x = jax.random.normal(k_x, (B, in_chans, H, W), jnp.float32)
    bb_w = 0.1 * jax.random.normal(k_bw, (feature_dim, in_chans, 3, 3), jnp.float32)
    bb_b = 0.1 * jax.random.normal(k_bb, (feature_dim,), jnp.float32)
    proj_w = 0.1 * jax.random.normal(k_pw, (embed_dim, feature_dim, window_width), jnp.float32)
    proj_b = 0.1 * jax.random.normal(k_pb, (embed_dim,), jnp.float32)

    # __init__-time feature_size probe on zeros (mimics the module's constructor).
    feat0 = simple_backbone(jnp.zeros((1, in_chans, H, W), jnp.float32), bb_w, bb_b)
    fs_h, fs_w = int(feat0.shape[2]), int(feat0.shape[3])            # (7, 7) here
    dw, mw = divmod(fs_w, window_width)
    feature_size = (fs_h, window_width * (dw + (1 if mw > 0 else 0)))  # (7, 8)

    # Forward.
    feat = simple_backbone(x, bb_w, bb_b)                            # (B, 8, 7, 7)
    proj_x, (pad_W,), size_info = hybrid_embed_1d_proj(
        feat, proj_w, proj_b, window_width)
    mismatch = (size_info["height"] != feature_size[0]) or \
               (size_info["width"] != feature_size[1])
    result = (proj_x, (pad_W,), size_info, mismatch)                 # full return tuple

    # Pure-JAX reference (f32): per-row Conv1d, stack, mean over rows, transpose.
    f_h = feat.shape[2]
    feat_pad = jnp.pad(feat, ((0, 0), (0, 0), (0, 0), (0, pad_W)))
    n_patches = feat_pad.shape[3] // window_width
    fp = feat_pad.reshape(B, feature_dim, f_h, n_patches, window_width)
    ref = jnp.einsum("bchpk,eck->behp", fp, proj_w) + proj_b[None, :, None, None]
    ref = ref.mean(axis=2).transpose(0, 2, 1)                        # (B, P, E)

    jax.block_until_ready(proj_x)
    assert proj_x.shape == (B, n_patches, embed_dim)
    # bf16 operands with f32 accumulation -> compare against f32 ref at relaxed tol.
    assert jnp.allclose(proj_x, ref, atol=1e-2, rtol=1e-2), \
        float(jnp.abs(proj_x - ref).max())
    print("KERNEL_OK")
</pallas_src>

<mosaic_0001>
module attributes {stable_mosaic.version = 11 : i64} {
  func.func @_proj_bias_kernel(%arg0: i32, %arg1: i32, %arg2: memref<8x128xbf16, #tpu.memory_space<vmem>>, %arg3: memref<128x128xbf16, #tpu.memory_space<vmem>>, %arg4: memref<1x128xf32, #tpu.memory_space<vmem>>, %arg5: memref<8x128xf32, #tpu.memory_space<vmem>>, %arg6: memref<8x128xf32, #tpu.memory_space<vmem>>) attributes {dimension_semantics = [#tpu.dimension_semantics<parallel>, #tpu.dimension_semantics<arbitrary>], iteration_bounds = array<i64: 1, 1>, scalar_prefetch = 0 : i64, scratch_operands = 1 : i64, tpu.core_type = #tpu.core_type<tc>, window_params = [{transform_indices = @transform_0, window_bounds = array<i64: 8, 128>}, {transform_indices = @transform_1, window_bounds = array<i64: 128, 128>}, {pipeline_mode = #tpu.pipeline_mode<synchronous>, transform_indices = @transform_2, window_bounds = array<i64: 1, 128>}, {transform_indices = @transform_3, window_bounds = array<i64: 8, 128>}]} {
    %c0_i32 = arith.constant 0 : i32
    %0 = arith.cmpi eq, %arg1, %c0_i32 : i32
    %1 = arith.extui %0 : i1 to i32
    %c0_i32_0 = arith.constant 0 : i32
    %2 = arith.cmpi ne, %1, %c0_i32_0 : i32
    scf.if %2 {
      %cst_10 = arith.constant 0.000000e+00 : f32
      %12 = vector.broadcast %cst_10 : f32 to vector<8x128xf32>
      %c0_11 = arith.constant 0 : index
      %c0_12 = arith.constant 0 : index
      %13 = vector.load %arg6[%c0_11, %c0_12] : memref<8x128xf32, #tpu.memory_space<vmem>>, vector<8x128xf32>
      tpu.vector_store %arg6[%c0_11, %c0_12], %12 {strides = array<i32>} : memref<8x128xf32, #tpu.memory_space<vmem>>, vector<8x128xf32>,
    } else {
    }
    %c0 = arith.constant 0 : index
    %c0_1 = arith.constant 0 : index
    %3 = vector.load %arg6[%c0, %c0_1] : memref<8x128xf32, #tpu.memory_space<vmem>>, vector<8x128xf32>
    %c0_2 = arith.constant 0 : index
    %c0_3 = arith.constant 0 : index
    %4 = vector.load %arg2[%c0_2, %c0_3] : memref<8x128xbf16, #tpu.memory_space<vmem>>, vector<8x128xbf16>
    %c0_4 = arith.constant 0 : index
    %c0_5 = arith.constant 0 : index
    %5 = vector.load %arg3[%c0_4, %c0_5] : memref<128x128xbf16, #tpu.memory_space<vmem>>, vector<128x128xbf16>
    %cst = arith.constant dense<0.000000e+00> : vector<8x128xf32>
    %6 = tpu.matmul %4, %5, %cst {dimension_numbers = #tpu.dot_dimension_numbers<[1], [0], [0], [1], [0, 0, 1, 1], [], []>} : vector<8x128xbf16>, vector<128x128xbf16>, vector<8x128xf32> -> vector<8x128xf32>
    %7 = arith.addf %3, %6 : vector<8x128xf32>
    %c0_6 = arith.constant 0 : index
    %c0_7 = arith.constant 0 : index
    %8 = vector.load %arg6[%c0_6, %c0_7] : memref<8x128xf32, #tpu.memory_space<vmem>>, vector<8x128xf32>
    tpu.vector_store %arg6[%c0_6, %c0_7], %7 {strides = array<i32>} : memref<8x128xf32, #tpu.memory_space<vmem>>, vector<8x128xf32>,
    %c0_i32_8 = arith.constant 0 : i32
    %9 = arith.cmpi eq, %arg1, %c0_i32_8 : i32
    %10 = arith.extui %9 : i1 to i32
    %c0_i32_9 = arith.constant 0 : i32
    %11 = arith.cmpi ne, %10, %c0_i32_9 : i32
    scf.if %11 {
      %c0_10 = arith.constant 0 : index
      %c0_11 = arith.constant 0 : index
      %12 = vector.load %arg6[%c0_10, %c0_11] : memref<8x128xf32, #tpu.memory_space<vmem>>, vector<8x128xf32>
      %c0_12 = arith.constant 0 : index
      %c0_13 = arith.constant 0 : index
      %13 = vector.load %arg4[%c0_12, %c0_13] : memref<1x128xf32, #tpu.memory_space<vmem>>, vector<1x128xf32>
      %14 = vector.broadcast %13 : vector<1x128xf32> to vector<8x128xf32>
      %15 = arith.addf %12, %14 : vector<8x128xf32>
      %c0_14 = arith.constant 0 : index
      %c0_15 = arith.constant 0 : index
      %16 = vector.load %arg5[%c0_14, %c0_15] : memref<8x128xf32, #tpu.memory_space<vmem>>, vector<8x128xf32>
      tpu.vector_store %arg5[%c0_14, %c0_15], %15 {strides = array<i32>} : memref<8x128xf32, #tpu.memory_space<vmem>>, vector<8x128xf32>,
    } else {
    }
    return
  }
  func.func @transform_0(%arg0: i32, %arg1: i32) -> (i32, i32) {
    %c0_i32 = arith.constant 0 : i32
    return %arg0, %arg1 : i32, i32
  }
  func.func @transform_1(%arg0: i32, %arg1: i32) -> (i32, i32) {
    %c0_i32 = arith.constant 0 : i32
    %c0_i32_0 = arith.constant 0 : i32
    return %arg1, %c0_i32 : i32, i32
  }
  func.func @transform_2(%arg0: i32, %arg1: i32) -> (i32, i32) {
    %c0_i32 = arith.constant 0 : i32
    %c0_i32_0 = arith.constant 0 : i32
    %c0_i32_1 = arith.constant 0 : i32
    return %c0_i32, %c0_i32_0 : i32, i32
  }
  func.func @transform_3(%arg0: i32, %arg1: i32) -> (i32, i32) {
    %c0_i32 = arith.constant 0 : i32
    %c0_i32_0 = arith.constant 0 : i32
    return %arg0, %c0_i32 : i32, i32
  }
}

</mosaic_0001>

<bundles_post_ra>
// kernel: tpu_custom_call.1
= control target key start
LH: loop header
LB: loop body
LE: loop exit
PB: predicated region body
PF: predicated region fallthrough
CT: control target
= control target key end

     0   :  { %8 = vsyncpa [#allocation4], 0  ;;  %s382_s0 = inlined_call_operand.hbm [shape: bf16[8,128], index: 0, kind: input, shape index: {}]   ;;  %s383_s1 = inlined_call_operand.hbm [shape: bf16[128,128], index: 1, kind: input, shape index: {}]   ;;  %s384_s2 = inlined_call_operand.vmem [shape: f32[1,128], index: 2, kind: input, shape index: {}]   ;;  %s385_s3 = inlined_call_operand.hbm [shape: f32[8,128], index: 3, kind: output, shape index: {}]  }
   0x1   :  { %9 = vsyncpa [#allocation7], 0 }
   0x2   :  { %10 = vsyncpa [#allocation5], 0  ;;  %s309_s12 = smov [#allocation3]   ;;  %s310_s14 = smov [#allocation6]  }
   0x3   :  { %s17_s13 = sshll.u32 %s309_s12, 4  ;;  %s26_s15 = sshll.u32 %s310_s14, 4  ;;  %s18_s13 = int_to_ptr.vmem [resolvable:$true] %s17_s13  ;;  %s336_s15 = int_to_ptr.vmem [resolvable:$true] %s26_s15 }
   0x4   :  { %s237_s18 = scalar_lea.hbm %s382_s0, 64 }
   0x5   :  { %p238_p0 = scmp.ne.s32.totalorder %s382_s0, %s237_s18  ;;  %p241_p1 = scmp.lt.u32.totalorder %s237_s18, %s382_s0 }
   0x7   :  { %p243_p2 = pnand %p241_p1, %p238_p0 }
   0x9   :  { %246 = shalt.err (!%p243_p2)
}
   0xa   :  { %s247_s23 = scalar_lea.vmem %s18_s13, 64  ;;  %p252_p4 = scmp.lt.s32.totalorder %s18_s13, %s18_s13 }
   0xb   :  { %p248_p3 = scmp.ne.s32.totalorder %s18_s13, %s247_s23  ;;  %p253_p5 = scmp.lt.s32.totalorder %s247_s23, %s247_s23 }
   0xd   :  { %p254_p6 = por %p253_p5, %p252_p4 }
   0xf   :  { %p255_p7 = pnand %p254_p6, %p248_p3 }
  0x11   :  { %258 = shalt.err (!%p255_p7)
}
  0x12   :  { %20 = dma.hbm_to_vmem [thread:$0]  %s382_s0, 64, %s18_s13, [#allocation4]  }
  0x13   :  { %s259_s28 = scalar_lea.hbm %s383_s1, 1024 }
  0x14   :  { %p260_p8 = scmp.ne.s32.totalorder %s383_s1, %s259_s28  ;;  %p263_p9 = scmp.lt.u32.totalorder %s259_s28, %s383_s1 }
  0x16   :  { %p265_p10 = pnand %p263_p9, %p260_p8 }
  0x18   :  { %268 = shalt.err (!%p265_p10)
}
  0x19   :  { %s269_s6 = scalar_lea.vmem %s336_s15, 1024  ;;  %p274_p12 = scmp.lt.s32.totalorder %s336_s15, %s336_s15 }
  0x1a   :  { %p270_p11 = scmp.ne.s32.totalorder %s336_s15, %s269_s6  ;;  %p275_p13 = scmp.lt.s32.totalorder %s269_s6, %s269_s6 }
  0x1c   :  { %p276_p0 = por %p275_p13, %p274_p12 }
  0x1e   :  { %p277_p1 = pnand %p276_p0, %p270_p11 }
  0x20   :  { %280 = shalt.err (!%p277_p1)
}
  0x21   :  { %s311_s0 = smov 64   ;;  %s312_s7 = smov 4  }
  0x22   :  { %32 = dma.hbm_to_vmem [thread:$0]  %s383_s1, 1024, %s336_s15, [#allocation7], %s311_s0, %s311_s0, %s312_s7  }
  0x23   :  { %303 = dma.done.wait [#allocation4], 64  }
  0x24   :  { %304 = vsyncadd [#allocation4], 4294967232 }
  0x25   :  { %305 = dma.done.wait [#allocation7], 1024  }
  0x26   :  { %306 = vsyncadd [#allocation7], 4294966272  ;;  %v313_v0 = vmov 0.0   ;;  %vm314_vm0 = vmmov 0   ;;  %v229_v1 = vld [vmem:[#allocation6] sm:$0xff]   ;;  %v230_v2 = vld [vmem:[#allocation6 + $0x8] sm:$0xff]  }
  0x27   :  { %202 = vmatprep.subr.bf16.mxu0 %v313_v0  ;;  %218 = vmatprep.mubr.msk.bf16.mxu0 %vm314_vm0, %v313_v0  ;;  %v231_v3 = vld [vmem:[#allocation6 + $0x10] sm:$0xff]   ;;  %v232_v4 = vld [vmem:[#allocation6 + $0x18] sm:$0xff]   ;;  %v233_v5 = vld [vmem:[#allocation6 + $0x20] sm:$0xff]   ;;  %s315_s11 = smov [#allocation8]  }
  0x28   :  { %203 = vmatpush3.bf16.msra.mxu0 %v229_v1  ;;  %v234_v6 = vld [vmem:[#allocation6 + $0x28] sm:$0xff]   ;;  %v235_v7 = vld [vmem:[#allocation6 + $0x30] sm:$0xff]   ;;  %v236_v8 = vld [vmem:[#allocation6 + $0x38] sm:$0xff]   ;;  %s174_s12 = sshll.u32 %s315_s11, 4  ;;  %s175_s12 = int_to_ptr.vmem [resolvable:$true] %s174_s12 }
  0x29   :  { %204 = vmatprep.subr.bf16.mxu0 %v313_v0  ;;  %v48_v9 = vld [vmem:[#allocation3] sm:$0xf]  ;;  %s281_s13 = scalar_lea.vmem %s175_s12, 128  ;;  %p286_p3 = scmp.lt.s32.totalorder %s175_s12, %s175_s12 }
  0x2a   :  { %v192_v10 = vld [vmem:[%s384_s2] ss:$0 sm:$0xff]  ;;  %p282_p2 = scmp.ne.s32.totalorder %s175_s12, %s281_s13  ;;  %p287_p4 = scmp.lt.s32.totalorder %s281_s13, %s281_s13 }
  0x2c   :  { %205 = vmatpush3.bf16.msra.mxu0 %v230_v2  ;;  %p288_p5 = por %p287_p4, %p286_p3 }
  0x2d   :  { %206 = vmatprep.subr.bf16.mxu0 %v313_v0 }
  0x2e   :  { %p289_p6 = pnand %p288_p5, %p282_p2 }
  0x30   :  { %207 = vmatpush3.bf16.msra.mxu0 %v231_v3 }
  0x31   :  { %208 = vmatprep.subr.bf16.mxu0 %v313_v0 }
  0x34   :  { %209 = vmatpush3.bf16.msra.mxu0 %v232_v4 }
  0x35   :  { %210 = vmatprep.subr.bf16.mxu0 %v313_v0 }
  0x38   :  { %211 = vmatpush3.bf16.msra.mxu0 %v233_v5 }
  0x39   :  { %212 = vmatprep.subr.bf16.mxu0 %v313_v0 }
  0x3c   :  { %213 = vmatpush3.bf16.msra.mxu0 %v234_v6 }
  0x3d   :  { %214 = vmatprep.subr.bf16.mxu0 %v313_v0 }
  0x40   :  { %215 = vmatpush3.bf16.msra.mxu0 %v235_v7 }
  0x41   :  { %216 = vmatprep.subr.bf16.mxu0 %v313_v0 }
  0x44   :  { %217 = vmatpush3.bf16.msra.mxu0 %v236_v8 }
  0x47   :  { %219 = vmatmul.mubr.bf16.vlgmr.msra.gmra.mrb[0].mxu0 %v48_v9 }
 0x11a   :  { %v147_v11 = vpop.f32.mrb[0].mxu0 }
 0x11b   :  { %v166_v12 = vadd.f32 %v192_v10, %v147_v11  ;;  %v220_v13 = vpop.f32.mrb[1].mxu0 }
 0x11c   :  { %v150_v14 = vpop.f32.mrb[2].mxu0 }
 0x11d   :  { %167 = vst [vmem:[#allocation8] sm:$0xff] %v166_v12  ;;  %v221_v15 = vpop.f32.mrb[3].mxu0 }
 0x11e   :  { %292 = shalt.err (!%p289_p6)
}
 0x11f   :  { %s293_s2 = scalar_lea.hbm %s385_s3, 128 }
 0x120   :  { %p294_p7 = scmp.ne.s32.totalorder %s385_s3, %s293_s2  ;;  %p297_p8 = scmp.lt.u32.totalorder %s293_s2, %s385_s3 }
 0x122   :  { %p299_p9 = pnand %p297_p8, %p294_p7 }
 0x124   :  { %302 = shalt.err (!%p299_p9)
}
 0x125   :  { %177 = dma.vmem_to_hbm [thread:$0]  %s175_s12, 128, %s385_s3, [#allocation5]  }
 0x126   :  { %307 = dma.done.wait [#allocation5], 128  }
 0x127   :  { %308 = vsyncadd [#allocation5], 4294967168 }
 0x128   :  { %181 = vsyncpa [#allocation4], 1 }
 0x129   :  { %182 = vsyncpa [#allocation7], 1 }
 0x12a   :  { %183 = vsyncpa [#allocation5], 1 }

</bundles_post_ra>
